<compile_context>
chip_gen: v6e
topology: v6e:2x2x1
jax: 0.10.0
libtpu: 0.0.40
codegen_flags: <defaults>
</compile_context>

<pallas_src>
import numpy as np
import jax
import jax.numpy as jnp
from jax import lax
from jax.experimental import pallas as pl
from jax.experimental.pallas import tpu as pltpu


# ----------------------------------------------------------------------------
# Pallas kernel: one batch element per grid step.  All activations live in a
# lane-flattened (H, W*C) layout.
# ----------------------------------------------------------------------------
def _up_doubleconv_kernel(x1_ref, x2p_ref, ryp_ref, rxp_ref, e2_ref,
                          wb1_ref, b1_ref, wb2_ref, b2_ref,
                          out_ref, pad2):
    H2 = out_ref.shape[1]
    f32 = jnp.float32

    # --- upsample (align_corners) + F.pad + channel concat + conv zero-pad ---
    # expressed as three MXU matmuls producing the full padded conv1 input
    # slab p1 of shape (H2+2, (W2+2)*Cin); all border rows/lanes come out 0.
    t = jnp.dot(ryp_ref[...], x1_ref[0], preferred_element_type=f32)  # (H2+2, W1*C1)
    p1 = (jnp.dot(x2p_ref[0], e2_ref[...], preferred_element_type=f32)
          + jnp.dot(t, rxp_ref[...], preferred_element_type=f32))     # (H2+2, (W2+2)*Cin)

    # --- conv1 3x3 pad=1 (no bias), BN scale folded into weights, + ReLU -----
    # 3 banded matmuls (one per dy); dx taps + channel contraction are inside
    # the band matrix, so no dx-shifted slices are needed.
    acc = jnp.dot(p1[0:H2, :], wb1_ref[0], preferred_element_type=f32)
    acc = acc + jnp.dot(p1[1:H2 + 1, :], wb1_ref[1], preferred_element_type=f32)
    acc = acc + jnp.dot(p1[2:H2 + 2, :], wb1_ref[2], preferred_element_type=f32)
    y = jnp.maximum(acc + b1_ref[...], 0.0)       # (H2, (W2+2)*Cmid); W borders stay 0

    # --- conv2 padded input: only the two H-border rows need zeroing ---------
    pad2[0:1, :] = jnp.zeros((1, pad2.shape[1]), f32)
    pad2[H2 + 1:H2 + 2, :] = jnp.zeros((1, pad2.shape[1]), f32)
    pad2[1:H2 + 1, :] = y

    # --- conv2 3x3 pad=1 (no bias), BN scale folded, + ReLU ------------------
    acc2 = jnp.dot(pad2[0:H2, :], wb2_ref[0], preferred_element_type=f32)
    acc2 = acc2 + jnp.dot(pad2[1:H2 + 1, :], wb2_ref[1], preferred_element_type=f32)
    acc2 = acc2 + jnp.dot(pad2[2:H2 + 2, :], wb2_ref[2], preferred_element_type=f32)
    out_ref[0] = jnp.maximum(acc2 + b2_ref[...], 0.0).astype(out_ref.dtype)


# ----------------------------------------------------------------------------
# Host-side constant builders (bilinear interp / placement / banded weights).
# ----------------------------------------------------------------------------
def _interp_matrix_align_corners(n_out, n_in):
    if n_in == 1:
        return np.ones((n_out, 1), np.float32)
    src = np.arange(n_out, dtype=np.float64) * (n_in - 1) / (n_out - 1)
    i0 = np.clip(np.floor(src).astype(np.int64), 0, n_in - 2)
    frac = (src - i0).astype(np.float32)
    m = np.zeros((n_out, n_in), np.float32)
    rows = np.arange(n_out)
    m[rows, i0] += 1.0 - frac
    m[rows, i0 + 1] += frac
    return m


def _pad_interp_matrix(n_target, n_in):
    """Interp matrix to 2*n_in followed by F.pad-style zero pad to n_target."""
    n_up = 2 * n_in
    m = _interp_matrix_align_corners(n_up, n_in)
    diff = n_target - n_up
    assert diff >= 0, "Up kernel assumes non-negative F.pad amounts"
    full = np.zeros((n_target, n_in), np.float32)
    full[diff // 2: diff // 2 + n_up] = m
    return full


def _build_kernel_constants(H1, W1, C1, H2, W2, C2, params):
    w1, s1, b1, w2, s2, b2 = [np.asarray(p, np.float32) for p in params]
    Cin = C1 + C2
    Cmid = w1.shape[-1]
    Cout = w2.shape[-1]

    ry = _interp_matrix_align_corners(2 * H1, H1)          # (2H1, H1)
    rx = _interp_matrix_align_corners(2 * W1, W1)          # (2W1, W1)
    dY, dX = H2 - 2 * H1, W2 - 2 * W1
    assert dY >= 0 and dX >= 0, "Up kernel assumes non-negative F.pad amounts"
    oy = 1 + dY // 2        # row offset inside the conv-padded slab
    ox = 1 + dX // 2        # col offset inside the conv-padded slab

    # ryp: (H2+2, H1) — H interpolation placed at F.pad + conv-pad row offset.
    ryp = np.zeros((H2 + 2, H1), np.float32)
    ryp[oy:oy + 2 * H1, :] = ry

    # rxp: (W1*C1, (W2+2)*Cin) — W interpolation + channel placement after the
    # C2 channels of x2 (torch.cat([x2, x1_up], dim=1)), at F.pad+conv offset.
    rxp = np.zeros((W1 * C1, (W2 + 2) * Cin), np.float32)
    for b in range(2 * W1):
        for w in range(W1):
            v = rx[b, w]
            if v == 0.0:
                continue
            for c in range(C1):
                rxp[w * C1 + c, (ox + b) * Cin + C2 + c] = v

    # e2: (W2*C2, (W2+2)*Cin) — place x2 channels first, at conv-pad offset.
    e2 = np.zeros((W2 * C2, (W2 + 2) * Cin), np.float32)
    for v in range(W2):
        for c in range(C2):
            e2[v * C2 + c, (v + 1) * Cin + c] = 1.0

    # Banded conv weights with BN scale folded in.
    w1s = w1 * s1[None, None, None, :]
    w2s = w2 * s2[None, None, None, :]

    wb1 = np.zeros((3, (W2 + 2) * Cin, (W2 + 2) * Cmid), np.float32)
    wb2 = np.zeros((3, (W2 + 2) * Cmid, W2 * Cout), np.float32)
    for dy in range(3):
        for dx in range(3):
            for u in range(W2):
                wb1[dy,
                    (u + dx) * Cin:(u + dx + 1) * Cin,
                    (u + 1) * Cmid:(u + 2) * Cmid] += w1s[dy, dx]
                wb2[dy,
                    (u + dx) * Cmid:(u + dx + 1) * Cmid,
                    u * Cout:(u + 1) * Cout] += w2s[dy, dx]

    # Biases tiled over W; zero on the W-border lanes so ReLU keeps them 0.
    b1t = np.zeros((1, (W2 + 2) * Cmid), np.float32)
    b1t[0, Cmid:(W2 + 1) * Cmid] = np.tile(b1, W2)
    b2t = np.tile(b2, W2)[None, :].astype(np.float32)     # (1, W2*Cout)

    return (jnp.asarray(ryp), jnp.asarray(rxp), jnp.asarray(e2),
            jnp.asarray(wb1), jnp.asarray(b1t), jnp.asarray(wb2),
            jnp.asarray(b2t))


# ----------------------------------------------------------------------------
# Wrapper: builds specs + grid and calls pallas_call.
# ----------------------------------------------------------------------------
def up_forward(x1_nhwc, x2_nhwc, params):
    N, H1, W1, C1 = x1_nhwc.shape
    N2, H2, W2, C2 = x2_nhwc.shape
    assert N2 == N
    w1 = params[0]
    Cin = C1 + C2
    Cmid = w1.shape[-1]
    Cout = params[3].shape[-1]
    assert w1.shape == (3, 3, Cin, Cmid)

    ryp, rxp, e2, wb1, b1t, wb2, b2t = _build_kernel_constants(
        H1, W1, C1, H2, W2, C2, params)

    # Lane-dense activation layouts: flatten (W, C) into the lane dimension.
    x1f = x1_nhwc.reshape(N, H1, W1 * C1)
    x2f = jnp.pad(x2_nhwc.reshape(N, H2, W2 * C2), ((0, 0), (1, 1), (0, 0)))

    out_flat = pl.pallas_call(
        _up_doubleconv_kernel,
        out_shape=jax.ShapeDtypeStruct((N, H2, W2 * Cout), jnp.float32),
        grid_spec=pltpu.PrefetchScalarGridSpec(
            num_scalar_prefetch=0,
            grid=(N,),
            in_specs=[
                pl.BlockSpec((1, H1, W1 * C1), lambda b: (b, 0, 0)),
                pl.BlockSpec((1, H2 + 2, W2 * C2), lambda b: (b, 0, 0)),
                pl.BlockSpec((H2 + 2, H1), lambda b: (0, 0)),
                pl.BlockSpec((W1 * C1, (W2 + 2) * Cin), lambda b: (0, 0)),
                pl.BlockSpec((W2 * C2, (W2 + 2) * Cin), lambda b: (0, 0)),
                pl.BlockSpec((3, (W2 + 2) * Cin, (W2 + 2) * Cmid),
                             lambda b: (0, 0, 0)),
                pl.BlockSpec((1, (W2 + 2) * Cmid), lambda b: (0, 0)),
                pl.BlockSpec((3, (W2 + 2) * Cmid, W2 * Cout),
                             lambda b: (0, 0, 0)),
                pl.BlockSpec((1, W2 * Cout), lambda b: (0, 0)),
            ],
            out_specs=pl.BlockSpec((1, H2, W2 * Cout), lambda b: (b, 0, 0)),
            scratch_shapes=[
                pltpu.VMEM((H2 + 2, (W2 + 2) * Cmid), jnp.float32),
            ],
        ),
        compiler_params=pltpu.CompilerParams(
            dimension_semantics=("parallel",)),
    )(x1f, x2f, ryp, rxp, e2, wb1, b1t, wb2, b2t)
    # (H2, W2*Cout) row-major == (H2, W2, Cout) row-major: free reshape.
    return out_flat.reshape(N, H2, W2, Cout)


# ----------------------------------------------------------------------------
# Deterministic parameter init (synthetic, matches module __init__ shapes).
# ----------------------------------------------------------------------------
def init_params(key, c_in, c_mid, c_out, eps=1e-5):
    k = jax.random.split(key, 6)
    w1 = 0.1 * jax.random.normal(k[0], (3, 3, c_in, c_mid), jnp.float32)   # HWIO
    w2 = 0.1 * jax.random.normal(k[1], (3, 3, c_mid, c_out), jnp.float32)  # HWIO
    # BatchNorm (inference mode): y = gamma*(x-mean)/sqrt(var+eps)+beta
    g1 = 1.0 + 0.1 * jax.random.normal(k[2], (c_mid,), jnp.float32)
    be1 = 0.1 * jax.random.normal(k[3], (c_mid,), jnp.float32)
    m1 = jnp.zeros((c_mid,), jnp.float32)
    v1 = jnp.ones((c_mid,), jnp.float32)
    g2 = 1.0 + 0.1 * jax.random.normal(k[4], (c_out,), jnp.float32)
    be2 = 0.1 * jax.random.normal(k[5], (c_out,), jnp.float32)
    m2 = jnp.zeros((c_out,), jnp.float32)
    v2 = jnp.ones((c_out,), jnp.float32)
    s1 = g1 / jnp.sqrt(v1 + eps)
    b1 = be1 - m1 * s1
    s2 = g2 / jnp.sqrt(v2 + eps)
    b2 = be2 - m2 * s2
    return w1, s1, b1, w2, s2, b2


# ----------------------------------------------------------------------------
# Pure-JAX reference (same math, different code path) for validation.
# ----------------------------------------------------------------------------
def reference_forward(x1_nhwc, x2_nhwc, params):
    w1, s1, b1, w2, s2, b2 = params
    _, H1, W1, _ = x1_nhwc.shape
    _, H2, W2, _ = x2_nhwc.shape
    ry = jnp.asarray(_pad_interp_matrix(H2, H1))
    rx = jnp.asarray(_pad_interp_matrix(W2, W1))
    up = jnp.einsum('ah,bw,nhwc->nabc', ry, rx, x1_nhwc)
    cat = jnp.concatenate([x2_nhwc, up], axis=-1)

    def conv(x, w):
        return lax.conv_general_dilated(
            x, w, window_strides=(1, 1), padding='SAME',
            dimension_numbers=('NHWC', 'HWIO', 'NHWC'))

    y = jnp.maximum(conv(cat, w1) * s1 + b1, 0.0)
    y = jnp.maximum(conv(y, w2) * s2 + b2, 0.0)
    return y


if __name__ == "__main__":
    key = jax.random.PRNGKey(0)
    in_channels, out_channels = 8, 4          # Up(8, 4, bilinear=True)
    mid_channels = in_channels // 2           # DoubleConv mid = in_channels // 2
    N, H1, W1 = 2, 8, 8                       # x1 spatial (to be upsampled 2x)
    H2, W2 = 16, 16                           # x2 spatial

    kx1, kx2, kp = jax.random.split(key, 3)
    # PyTorch-convention NCHW inputs (x1 and x2 each carry in_channels // 2).
    x1_nchw = jax.random.normal(kx1, (N, in_channels // 2, H1, W1), jnp.float32)
    x2_nchw = jax.random.normal(kx2, (N, in_channels // 2, H2, W2), jnp.float32)

    # Convert to the kernel's NHWC layout.
    x1 = jnp.transpose(x1_nchw, (0, 2, 3, 1))
    x2 = jnp.transpose(x2_nchw, (0, 2, 3, 1))

    params = init_params(kp, in_channels, mid_channels, out_channels)

    out = up_forward(x1, x2, params)
    out = jax.block_until_ready(out)

    ref = reference_forward(x1, x2, params)
    np.testing.assert_allclose(np.asarray(out), np.asarray(ref),
                               rtol=1e-3, atol=1e-3)
    print("KERNEL_OK")
</pallas_src>

<mosaic_0001>
module attributes {stable_mosaic.version = 11 : i64} {
  func.func @_up_doubleconv_kernel(%arg0: i32, %arg1: memref<1x8x32xf32, #tpu.memory_space<vmem>>, %arg2: memref<1x18x64xf32, #tpu.memory_space<vmem>>, %arg3: memref<18x8xf32, #tpu.memory_space<vmem>>, %arg4: memref<32x144xf32, #tpu.memory_space<vmem>>, %arg5: memref<64x144xf32, #tpu.memory_space<vmem>>, %arg6: memref<3x144x72xf32, #tpu.memory_space<vmem>>, %arg7: memref<1x72xf32, #tpu.memory_space<vmem>>, %arg8: memref<3x72x64xf32, #tpu.memory_space<vmem>>, %arg9: memref<1x64xf32, #tpu.memory_space<vmem>>, %arg10: memref<1x16x64xf32, #tpu.memory_space<vmem>>, %arg11: memref<18x72xf32, #tpu.memory_space<vmem>>) attributes {dimension_semantics = [#tpu.dimension_semantics<parallel>], iteration_bounds = array<i64: 2>, scalar_prefetch = 0 : i64, scratch_operands = 1 : i64, tpu.core_type = #tpu.core_type<tc>, window_params = [{transform_indices = @transform_0, window_bounds = array<i64: 1, 8, 32>}, {transform_indices = @transform_1, window_bounds = array<i64: 1, 18, 64>}, {pipeline_mode = #tpu.pipeline_mode<synchronous>, transform_indices = @transform_2, window_bounds = array<i64: 18, 8>}, {pipeline_mode = #tpu.pipeline_mode<synchronous>, transform_indices = @transform_3, window_bounds = array<i64: 32, 144>}, {pipeline_mode = #tpu.pipeline_mode<synchronous>, transform_indices = @transform_4, window_bounds = array<i64: 64, 144>}, {pipeline_mode = #tpu.pipeline_mode<synchronous>, transform_indices = @transform_5, window_bounds = array<i64: 3, 144, 72>}, {pipeline_mode = #tpu.pipeline_mode<synchronous>, transform_indices = @transform_6, window_bounds = array<i64: 1, 72>}, {pipeline_mode = #tpu.pipeline_mode<synchronous>, transform_indices = @transform_7, window_bounds = array<i64: 3, 72, 64>}, {pipeline_mode = #tpu.pipeline_mode<synchronous>, transform_indices = @transform_8, window_bounds = array<i64: 1, 64>}, {transform_indices = @transform_9, window_bounds = array<i64: 1, 16, 64>}]} {
    %c0 = arith.constant 0 : index
    %c0_0 = arith.constant 0 : index
    %0 = vector.load %arg3[%c0, %c0_0] : memref<18x8xf32, #tpu.memory_space<vmem>>, vector<18x8xf32>
    %c0_1 = arith.constant 0 : index
    %c0_2 = arith.constant 0 : index
    %c0_3 = arith.constant 0 : index
    %1 = vector.load %arg1[%c0_1, %c0_2, %c0_3] : memref<1x8x32xf32, #tpu.memory_space<vmem>>, vector<1x8x32xf32>
    %2 = vector.shape_cast %1 : vector<1x8x32xf32> to vector<8x32xf32>
    %cst = arith.constant dense<0.000000e+00> : vector<18x32xf32>
    %3 = tpu.matmul %0, %2, %cst {dimension_numbers = #tpu.dot_dimension_numbers<[1], [0], [0], [1], [0, 0, 1, 1], [], []>} : vector<18x8xf32>, vector<8x32xf32>, vector<18x32xf32> -> vector<18x32xf32>
    %c0_4 = arith.constant 0 : index
    %c0_5 = arith.constant 0 : index
    %c0_6 = arith.constant 0 : index
    %4 = vector.load %arg2[%c0_4, %c0_5, %c0_6] : memref<1x18x64xf32, #tpu.memory_space<vmem>>, vector<1x18x64xf32>
    %5 = vector.shape_cast %4 : vector<1x18x64xf32> to vector<18x64xf32>
    %c0_7 = arith.constant 0 : index
    %c0_8 = arith.constant 0 : index
    %6 = vector.load %arg5[%c0_7, %c0_8] : memref<64x144xf32, #tpu.memory_space<vmem>>, vector<64x144xf32>
    %cst_9 = arith.constant dense<0.000000e+00> : vector<18x144xf32>
    %7 = tpu.matmul %5, %6, %cst_9 {dimension_numbers = #tpu.dot_dimension_numbers<[1], [0], [0], [1], [0, 0, 1, 1], [], []>} : vector<18x64xf32>, vector<64x144xf32>, vector<18x144xf32> -> vector<18x144xf32>
    %c0_10 = arith.constant 0 : index
    %c0_11 = arith.constant 0 : index
    %8 = vector.load %arg4[%c0_10, %c0_11] : memref<32x144xf32, #tpu.memory_space<vmem>>, vector<32x144xf32>
    %cst_12 = arith.constant dense<0.000000e+00> : vector<18x144xf32>
    %9 = tpu.matmul %3, %8, %cst_12 {dimension_numbers = #tpu.dot_dimension_numbers<[1], [0], [0], [1], [0, 0, 1, 1], [], []>} : vector<18x32xf32>, vector<32x144xf32>, vector<18x144xf32> -> vector<18x144xf32>
    %10 = arith.addf %7, %9 : vector<18x144xf32>
    %11 = vector.extract_strided_slice %10 {offsets = [0, 0], sizes = [16, 144], strides = [1, 1]} : vector<18x144xf32> to vector<16x144xf32>
    %c0_13 = arith.constant 0 : index
    %c0_14 = arith.constant 0 : index
    %c0_15 = arith.constant 0 : index
    %12 = vector.load %arg6[%c0_13, %c0_14, %c0_15] : memref<3x144x72xf32, #tpu.memory_space<vmem>>, vector<1x144x72xf32>
    %13 = vector.shape_cast %12 : vector<1x144x72xf32> to vector<144x72xf32>
    %cst_16 = arith.constant dense<0.000000e+00> : vector<16x72xf32>
    %14 = tpu.matmul %11, %13, %cst_16 {dimension_numbers = #tpu.dot_dimension_numbers<[1], [0], [0], [1], [0, 0, 1, 1], [], []>} : vector<16x144xf32>, vector<144x72xf32>, vector<16x72xf32> -> vector<16x72xf32>
    %15 = vector.extract_strided_slice %10 {offsets = [1, 0], sizes = [16, 144], strides = [1, 1]} : vector<18x144xf32> to vector<16x144xf32>
    %c1 = arith.constant 1 : index
    %c0_17 = arith.constant 0 : index
    %c0_18 = arith.constant 0 : index
    %16 = vector.load %arg6[%c1, %c0_17, %c0_18] : memref<3x144x72xf32, #tpu.memory_space<vmem>>, vector<1x144x72xf32>
    %17 = vector.shape_cast %16 : vector<1x144x72xf32> to vector<144x72xf32>
    %cst_19 = arith.constant dense<0.000000e+00> : vector<16x72xf32>
    %18 = tpu.matmul %15, %17, %cst_19 {dimension_numbers = #tpu.dot_dimension_numbers<[1], [0], [0], [1], [0, 0, 1, 1], [], []>} : vector<16x144xf32>, vector<144x72xf32>, vector<16x72xf32> -> vector<16x72xf32>
    %19 = arith.addf %14, %18 : vector<16x72xf32>
    %20 = vector.extract_strided_slice %10 {offsets = [2, 0], sizes = [16, 144], strides = [1, 1]} : vector<18x144xf32> to vector<16x144xf32>
    %c2 = arith.constant 2 : index
    %c0_20 = arith.constant 0 : index
    %c0_21 = arith.constant 0 : index
    %21 = vector.load %arg6[%c2, %c0_20, %c0_21] : memref<3x144x72xf32, #tpu.memory_space<vmem>>, vector<1x144x72xf32>
    %22 = vector.shape_cast %21 : vector<1x144x72xf32> to vector<144x72xf32>
    %cst_22 = arith.constant dense<0.000000e+00> : vector<16x72xf32>
    %23 = tpu.matmul %20, %22, %cst_22 {dimension_numbers = #tpu.dot_dimension_numbers<[1], [0], [0], [1], [0, 0, 1, 1], [], []>} : vector<16x144xf32>, vector<144x72xf32>, vector<16x72xf32> -> vector<16x72xf32>
    %24 = arith.addf %19, %23 : vector<16x72xf32>
    %c0_23 = arith.constant 0 : index
    %c0_24 = arith.constant 0 : index
    %25 = vector.load %arg7[%c0_23, %c0_24] : memref<1x72xf32, #tpu.memory_space<vmem>>, vector<1x72xf32>
    %26 = vector.broadcast %25 : vector<1x72xf32> to vector<16x72xf32>
    %27 = arith.addf %24, %26 : vector<16x72xf32>
    %cst_25 = arith.constant 0.000000e+00 : f32
    %28 = vector.broadcast %cst_25 : f32 to vector<16x72xf32>
    %29 = arith.maximumf %27, %28 : vector<16x72xf32>
    %cst_26 = arith.constant 0.000000e+00 : f32
    %30 = vector.broadcast %cst_26 : f32 to vector<1x72xf32>
    %c0_27 = arith.constant 0 : index
    %c0_28 = arith.constant 0 : index
    %31 = vector.load %arg11[%c0_27, %c0_28] : memref<18x72xf32, #tpu.memory_space<vmem>>, vector<1x72xf32>
    tpu.vector_store %arg11[%c0_27, %c0_28], %30 {strides = array<i32>} : memref<18x72xf32, #tpu.memory_space<vmem>>, vector<1x72xf32>,
    %cst_29 = arith.constant 0.000000e+00 : f32
    %32 = vector.broadcast %cst_29 : f32 to vector<1x72xf32>
    %c17 = arith.constant 17 : index
    %c0_30 = arith.constant 0 : index
    %33 = vector.load %arg11[%c17, %c0_30] : memref<18x72xf32, #tpu.memory_space<vmem>>, vector<1x72xf32>
    tpu.vector_store %arg11[%c17, %c0_30], %32 {strides = array<i32>} : memref<18x72xf32, #tpu.memory_space<vmem>>, vector<1x72xf32>,
    %c1_31 = arith.constant 1 : index
    %c0_32 = arith.constant 0 : index
    %34 = vector.load %arg11[%c1_31, %c0_32] : memref<18x72xf32, #tpu.memory_space<vmem>>, vector<16x72xf32>
    tpu.vector_store %arg11[%c1_31, %c0_32], %29 {strides = array<i32>} : memref<18x72xf32, #tpu.memory_space<vmem>>, vector<16x72xf32>,
    %c0_33 = arith.constant 0 : index
    %c0_34 = arith.constant 0 : index
    %35 = vector.load %arg11[%c0_33, %c0_34] : memref<18x72xf32, #tpu.memory_space<vmem>>, vector<16x72xf32>
    %c0_35 = arith.constant 0 : index
    %c0_36 = arith.constant 0 : index
    %c0_37 = arith.constant 0 : index
    %36 = vector.load %arg8[%c0_35, %c0_36, %c0_37] : memref<3x72x64xf32, #tpu.memory_space<vmem>>, vector<1x72x64xf32>
    %37 = vector.shape_cast %36 : vector<1x72x64xf32> to vector<72x64xf32>
    %cst_38 = arith.constant dense<0.000000e+00> : vector<16x64xf32>
    %38 = tpu.matmul %35, %37, %cst_38 {dimension_numbers = #tpu.dot_dimension_numbers<[1], [0], [0], [1], [0, 0, 1, 1], [], []>} : vector<16x72xf32>, vector<72x64xf32>, vector<16x64xf32> -> vector<16x64xf32>
    %c1_39 = arith.constant 1 : index
    %c0_40 = arith.constant 0 : index
    %39 = vector.load %arg11[%c1_39, %c0_40] : memref<18x72xf32, #tpu.memory_space<vmem>>, vector<16x72xf32>
    %c1_41 = arith.constant 1 : index
    %c0_42 = arith.constant 0 : index
    %c0_43 = arith.constant 0 : index
    %40 = vector.load %arg8[%c1_41, %c0_42, %c0_43] : memref<3x72x64xf32, #tpu.memory_space<vmem>>, vector<1x72x64xf32>
    %41 = vector.shape_cast %40 : vector<1x72x64xf32> to vector<72x64xf32>
    %cst_44 = arith.constant dense<0.000000e+00> : vector<16x64xf32>
    %42 = tpu.matmul %39, %41, %cst_44 {dimension_numbers = #tpu.dot_dimension_numbers<[1], [0], [0], [1], [0, 0, 1, 1], [], []>} : vector<16x72xf32>, vector<72x64xf32>, vector<16x64xf32> -> vector<16x64xf32>
    %43 = arith.addf %38, %42 : vector<16x64xf32>
    %c2_45 = arith.constant 2 : index
    %c0_46 = arith.constant 0 : index
    %44 = vector.load %arg11[%c2_45, %c0_46] : memref<18x72xf32, #tpu.memory_space<vmem>>, vector<16x72xf32>
    %c2_47 = arith.constant 2 : index
    %c0_48 = arith.constant 0 : index
    %c0_49 = arith.constant 0 : index
    %45 = vector.load %arg8[%c2_47, %c0_48, %c0_49] : memref<3x72x64xf32, #tpu.memory_space<vmem>>, vector<1x72x64xf32>
    %46 = vector.shape_cast %45 : vector<1x72x64xf32> to vector<72x64xf32>
    %cst_50 = arith.constant dense<0.000000e+00> : vector<16x64xf32>
    %47 = tpu.matmul %44, %46, %cst_50 {dimension_numbers = #tpu.dot_dimension_numbers<[1], [0], [0], [1], [0, 0, 1, 1], [], []>} : vector<16x72xf32>, vector<72x64xf32>, vector<16x64xf32> -> vector<16x64xf32>
    %48 = arith.addf %43, %47 : vector<16x64xf32>
    %c0_51 = arith.constant 0 : index
    %c0_52 = arith.constant 0 : index
    %49 = vector.load %arg9[%c0_51, %c0_52] : memref<1x64xf32, #tpu.memory_space<vmem>>, vector<1x64xf32>
    %50 = vector.broadcast %49 : vector<1x64xf32> to vector<16x64xf32>
    %51 = arith.addf %48, %50 : vector<16x64xf32>
    %cst_53 = arith.constant 0.000000e+00 : f32
    %52 = vector.broadcast %cst_53 : f32 to vector<16x64xf32>
    %53 = arith.maximumf %51, %52 : vector<16x64xf32>
    %c0_54 = arith.constant 0 : index
    %c0_55 = arith.constant 0 : index
    %c0_56 = arith.constant 0 : index
    %54 = vector.load %arg10[%c0_54, %c0_55, %c0_56] : memref<1x16x64xf32, #tpu.memory_space<vmem>>, vector<1x16x64xf32>
    %55 = vector.shape_cast %54 : vector<1x16x64xf32> to vector<16x64xf32>
    %56 = vector.shape_cast %53 : vector<16x64xf32> to vector<1x16x64xf32>
    tpu.vector_store %arg10[%c0_54, %c0_55, %c0_56], %56 {strides = array<i32>} : memref<1x16x64xf32, #tpu.memory_space<vmem>>, vector<1x16x64xf32>,
    return
  }
  func.func @transform_0(%arg0: i32) -> (i32, i32, i32) {
    %c0_i32 = arith.constant 0 : i32
    %c0_i32_0 = arith.constant 0 : i32
    %c0_i32_1 = arith.constant 0 : i32
    return %arg0, %c0_i32, %c0_i32_0 : i32, i32, i32
  }
  func.func @transform_1(%arg0: i32) -> (i32, i32, i32) {
    %c0_i32 = arith.constant 0 : i32
    %c0_i32_0 = arith.constant 0 : i32
    %c0_i32_1 = arith.constant 0 : i32
    return %arg0, %c0_i32, %c0_i32_0 : i32, i32, i32
  }
  func.func @transform_2(%arg0: i32) -> (i32, i32) {
    %c0_i32 = arith.constant 0 : i32
    %c0_i32_0 = arith.constant 0 : i32
    %c0_i32_1 = arith.constant 0 : i32
    return %c0_i32, %c0_i32_0 : i32, i32
  }
  func.func @transform_3(%arg0: i32) -> (i32, i32) {
    %c0_i32 = arith.constant 0 : i32
    %c0_i32_0 = arith.constant 0 : i32
    %c0_i32_1 = arith.constant 0 : i32
    return %c0_i32, %c0_i32_0 : i32, i32
  }
  func.func @transform_4(%arg0: i32) -> (i32, i32) {
    %c0_i32 = arith.constant 0 : i32
    %c0_i32_0 = arith.constant 0 : i32
    %c0_i32_1 = arith.constant 0 : i32
    return %c0_i32, %c0_i32_0 : i32, i32
  }
  func.func @transform_5(%arg0: i32) -> (i32, i32, i32) {
    %c0_i32 = arith.constant 0 : i32
    %c0_i32_0 = arith.constant 0 : i32
    %c0_i32_1 = arith.constant 0 : i32
    %c0_i32_2 = arith.constant 0 : i32
    return %c0_i32, %c0_i32_0, %c0_i32_1 : i32, i32, i32
  }
  func.func @transform_6(%arg0: i32) -> (i32, i32) {
    %c0_i32 = arith.constant 0 : i32
    %c0_i32_0 = arith.constant 0 : i32
    %c0_i32_1 = arith.constant 0 : i32
    return %c0_i32, %c0_i32_0 : i32, i32
  }
  func.func @transform_7(%arg0: i32) -> (i32, i32, i32) {
    %c0_i32 = arith.constant 0 : i32
    %c0_i32_0 = arith.constant 0 : i32
    %c0_i32_1 = arith.constant 0 : i32
    %c0_i32_2 = arith.constant 0 : i32
    return %c0_i32, %c0_i32_0, %c0_i32_1 : i32, i32, i32
  }
  func.func @transform_8(%arg0: i32) -> (i32, i32) {
    %c0_i32 = arith.constant 0 : i32
    %c0_i32_0 = arith.constant 0 : i32
    %c0_i32_1 = arith.constant 0 : i32
    return %c0_i32, %c0_i32_0 : i32, i32
  }
  func.func @transform_9(%arg0: i32) -> (i32, i32, i32) {
    %c0_i32 = arith.constant 0 : i32
    %c0_i32_0 = arith.constant 0 : i32
    %c0_i32_1 = arith.constant 0 : i32
    return %arg0, %c0_i32, %c0_i32_0 : i32, i32, i32
  }
}

</mosaic_0001>

<bundles_post_ra>
// kernel: tpu_custom_call.1
= control target key start
LH: loop header
LB: loop body
LE: loop exit
PB: predicated region body
PF: predicated region fallthrough
CT: control target
= control target key end

     0   :  { %14 = vsyncpa [#allocation4], 0  ;;  %s2356_s0 = inlined_call_operand.vmem [shape: f32[2,8,32], index: 0, kind: input, shape index: {}]   ;;  %s2357_s1 = inlined_call_operand.vmem [shape: f32[2,18,64], index: 1, kind: input, shape index: {}]   ;;  %s2358_s2 = inlined_call_operand.vmem [shape: f32[18,8], index: 2, kind: input, shape index: {}]   ;;  %s2359_s3 = inlined_call_operand.vmem [shape: f32[32,144], index: 3, kind: input, shape index: {}]   ;;  %s2360_s4 = inlined_call_operand.hbm [shape: f32[64,144], index: 4, kind: input, shape index: {}]   ;;  %s2361_s5 = inlined_call_operand.vmem [shape: f32[3,144,72], index: 5, kind: input, shape index: {}]   ;;  %s2362_s6 = inlined_call_operand.vmem [shape: f32[1,72], index: 6, kind: input, shape index: {}]   ;;  %s2363_s7 = inlined_call_operand.vmem [shape: f32[3,72,64], index: 7, kind: input, shape index: {}]   ;;  %s2364_s8 = inlined_call_operand.vmem [shape: f32[1,64], index: 8, kind: input, shape index: {}]   ;;  %s2365_s9 = inlined_call_operand.hbm [shape: f32[2,16,64], index: 9, kind: output, shape index: {}]  }
   0x1   :  { %15 = vsyncpa [#allocation5], 0 }
   0x2   :  { %17 = vsyncpa [#allocation5 + $0x1], 0  ;;  %s1818_s30 = smov 0   ;;  %s1820_s10 = smov 0  }
   0x3   :  { %s1822_s11 = smov 0   ;;  %s1824_s12 = smov 0  }
   0x4 LB: > { %s1839_s13 = sadd.s32 4294967295, %s1758_s12   ;;  %s1408_s14 = sadd.s32 4294967294, %s1758_s12   ;;  %s1758_s12 = sphi %s1824_s12, %s2373_s12   ;;  %s1754_s11 = sphi %s1822_s11, %s2372_s11   ;;  %s1750_s10 = sphi %s1820_s10, %s2371_s10   ;;  %s1746_s30 = sphi %s1818_s30, %s2370_s30  }
   0x5   : > { %s1843_s15 = sadd.s32 1, %s1758_s12   ;;  %s229_s16 = sadd.s32 1, %s1754_s11 }
   0x6   : > { %s226_s17 = ssub.s32 %s1758_s12, %s1843_s15  ;;  %p239_p0 = scmp.ne.s32.totalorder %s1754_s11, %s1750_s10 }
   0x7   : > { %p227_p1 = scmp.eq.s32.totalorder %s226_s17, 0  ;;  %p240_p2 = scmp.eq.s32.totalorder %s1839_s13, 1 }
   0x8   : > { %p245_p3 = scmp.ne.s32.totalorder %s1750_s10, %s1746_s30  ;;  %p246_p4 = scmp.eq.s32.totalorder %s1408_s14, 1 }
   0x9   : > { %s1854_s18 = scalar_select %p227_p1, %s1754_s11, %s229_s16  }
   0xa   : > { %p1856_p5 = por %p240_p2, %p239_p0  ;;  %p1860_p6 = por %p246_p4, %p245_p3 }
   0xb   : > { %p1409_p7 = scmp.ge.s32.totalorder %s1758_s12, 1  ;;  %p253_p8 = scmp.lt.s32.totalorder %s1758_s12, 3 }
   0xc   : > { %s2367_s20 = scalar_select %p1860_p6, 1, 0 }
   0xd   : > { %p1626_p9 = scmp.eq.s32.totalorder %s1839_s13, 0  ;;  %p1867_p10 = pnand %p1409_p7, %p253_p8 }
   0xe   : > { %s1760_s22 = smov [#allocation3]  }
   0xf   : > { %s271_s23 = sshll.u32 %s1760_s22, 4  ;;  %p1618_p11 = pneg %p1867_p10  ;;  %s272_s23 = int_to_ptr.vmem [resolvable:$true] %s271_s23 }
  0x10   : > { %s1679_s24 = scalar_lea.vmem %s272_s23, 2048  ;;  %p1687_p3 = scmp.lt.s32.totalorder %s272_s23, %s272_s23 }
  0x11   : > { %p1619_p12 = pnand %p1626_p9, %p1618_p11  ;;  %p1680_p0 = scmp.ne.s32.totalorder %s272_s23, %s1679_s24 }
  0x12   : > { %p1688_p4 = scmp.lt.s32.totalorder %s1679_s24, %s1679_s24 }
  0x13   : > { %p1670_p13 = pneg %p1619_p12 }
  0x14   : > { %p1689_p6 = por %p1688_p4, %p1687_p3 }
  0x15   : > { %p1682_p1 = pnand %p1680_p0, %p1670_p13 }
  0x17   : > { %p1683_p2 = pneg %p1682_p1 }
  0x19   : > { %p1690_p7 = pnand %p1689_p6, %p1683_p2 }
  0x1b   : > { %1693 = shalt.err (!%p1690_p7)
}
  0x1c   : > { %s1761_s25 = smov 256   ;;  %s1762_s26 = smov 16  }
  0x1d   : > { %1621 = dma.hbm_to_vmem [thread:$0]  (!%p1619_p12), %s2360_s4, 2048, %s272_s23, [#allocation4], %s1761_s25, %s1761_s25, %s1762_s26  }
  0x1e   : > { %314 = sbr.rel (%p1867_p10) target bundleno = 924 (0x39c), region = 56 }
  0x23   : > { %1737 = dma.done.wait (%p1626_p9), [#allocation4], 2048  }
  0x24   : > { %1739 = vsyncadd (%p1626_p9), [#allocation4], 4294965248  ;;  %p354_p8 = scmp.lt.s32.totalorder %s1839_s13, 1  ;;  %v1763_v0 = vmov 0.0   ;;  %vm1764_vm0 = vmmov 0   ;;  %vm367_vm1 = vcmask 64512  }
  0x25   : > { %1537 = vmatprep.subr.mxu0 %v1763_v0  ;;  %1539 = vmatprep.mubr.msk.f32.mxu0 %vm1764_vm0, %v1763_v0  ;;  %v363_v2 = vld [vmem:[%s2358_s2] sm:$0xff]  ;;  %v475_v3 = vld [vmem:[#allocation3 + $0x78] sm:$0xff]  ;;  %v474_v4 = vld [vmem:[#allocation3 + $0x70] sm:$0xff]  ;;  %vm577_vm2 = vcmask 523264   ;;  %vm484_vm3 = vcmask 261120   ;;  %vm726_vm4 = vcmask 130048  }
  0x26   : > { %s1889_s29 = scalar_select %p354_p8, %s1839_s13, 1  ;;  %558 = vmatprep.mubr.f32.mxu1 %v1763_v0  ;;  %v473_v5 = vld [vmem:[#allocation3 + $0x68] sm:$0xff]  ;;  %v472_v6 = vld [vmem:[#allocation3 + $0x60] sm:$0xff]  ;;  %v364_v7 = vld [vmem:[%s2358_s2 + $0x8] sm:$0xff]  ;;  %vm713_vm5 = vcmask 1046528   ;;  %vm904_vm6 = vcmask 1045504  }
  0x27   : > { %v471_v8 = vld [vmem:[#allocation3 + $0x58] sm:$0xff]  ;;  %v470_v9 = vld [vmem:[#allocation3 + $0x50] sm:$0xff]  ;;  %v483_v10 = vld [vmem:[%s2359_s3 + $0x38] sm:$0xff]  ;;  %vm1009_vm7 = vcmask 581632   ;;  %vm1012_vm8 = vcmask 588800   ;;  %s1499_s25 = sshll.u32 %s1839_s13, 8 }
  0x28   : > { %s1415_s14 = sshll.u32 %s1889_s29, 3  ;;  %v469_v11 = vld [vmem:[#allocation3 + $0x48] sm:$0xff]  ;;  %518 = vmatprep.subr.mxu1 %v483_v10  ;;  %v482_v12 = vld [vmem:[%s2359_s3 + $0x30] sm:$0xff]  ;;  %v468_v13 = vld [vmem:[#allocation3 + $0x40] sm:$0xff]  ;;  %s1611_s23 = smul.u32 24, %s1889_s29 }
  0x29   : > { %s357_s21 = scalar_lea.vmem %s2356_s0, %s1415_s14  ;;  %v481_v14 = vld [vmem:[%s2359_s3 + $0x28] sm:$0xff]  ;;  %v365_v15 = vld [vmem:[%s2358_s2 + $0x10] sm:$0x3]  ;;  %519 = vmatpush1.msra.mxu1 %v482_v12  ;;  %v480_v18 = vld [vmem:[%s2359_s3 + $0x20] sm:$0xff]  ;;  %1010 = vst.msk [vmem:[#allocation2] sm:$0x1] %vm1009_vm7, %v1763_v0  ;;  %s2310_s14 = scalar_lea.hbm %s2365_s9, %s1499_s25 }
  0x2a   : > { %v366_v1 = vld [vmem:[%s357_s21] sm:$0xff]  ;;  %v467_v16 = vld [vmem:[#allocation3 + $0x38] sm:$0xff]  ;;  %v466_v17 = vld [vmem:[#allocation3 + $0x30] sm:$0xff]  ;;  %520 = vmatprep.subr.mxu1 %v481_v14  ;;  %s362_s17 = scalar_lea.vmem %s2357_s1, %s1611_s23  ;;  %1011 = vst.msk [vmem:[#allocation2 + $0x11] sm:$0x1] %vm1009_vm7, %v1763_v0  ;;  %s351_s21 = sand.u32 1, %s1750_s10  }
  0x2b   : > { %1538 = vmatpush3.msra.mxu0 %v366_v1  ;;  %v465_v19 = vld [vmem:[#allocation3 + $0x28] sm:$0xff]  ;;  %v479_v20 = vld [vmem:[%s2359_s3 + $0x18] sm:$0xff]  ;;  %v478_v22 = vld [vmem:[%s2359_s3 + $0x10] sm:$0xff]  ;;  %521 = vmatpush1.msra.mxu1 %v480_v18  ;;  %s1414_s22 = sshll.u32 %s351_s21, 4  ;;  %s2316_s13 = scalar_lea.sflag [#allocation5], %s351_s21 }
  0x2c   : > { %1540 = vmatmul.mubr.msk.f32.vlgmr.msra.gmra.mxu0 %vm367_vm1, %v363_v2  ;;  %603 = vmatprep.subr.mxu0 %v475_v3  ;;  %v464_v21 = vld [vmem:[#allocation3 + $0x20] sm:$0xff]  ;;  %v463_v23 = vld [vmem:[#allocation3 + $0x18] sm:$0xff]  ;;  %v462_v24 = vld [vmem:[#allocation3 + $0x10] sm:$0xff]  ;;  %s353_s26 = scalar_lea.vmem [#allocation6], %s1414_s22 }
  0x2d   : > { %1542 = vmatprep.mubr.msk.f32.mxu0 %vm1764_vm0, %v1763_v0  ;;  %604 = vmatpush1.msra.mxu0 %v474_v4  ;;  %v477_v25 = vld [vmem:[%s2359_s3 + $0x8] sm:$0xff]  ;;  %v461_v26 = vld [vmem:[#allocation3 + $0x8] sm:$0xff]  ;;  %v460_v27 = vld [vmem:[#allocation3] sm:$0xff]  ;;  %s1322_s27 = sshll.u32 %s353_s26, 4  ;;  %s2312_s27 = int_to_ptr.vmem [resolvable:$true] %s1322_s27 }
  0x2e   : > { %605 = vmatprep.subr.mxu0 %v473_v5  ;;  %522 = vmatprep.subr.mxu1 %v479_v20  ;;  %v457_v28 = vld [vmem:[%s362_s17] sm:$0xff]  ;;  %v458_v30 = vld [vmem:[%s362_s17 + $0x8] sm:$0xff]  ;;  %v459_v31 = vld [vmem:[%s362_s17 + $0x10] sm:$0x3]  ;;  %s1694_s16 = scalar_lea.vmem %s2312_s27, 256  ;;  %s1765_s17 = smov [#allocation6]  }
  0x2f   : > { %606 = vmatpush1.msra.mxu0 %v472_v6  ;;  %523 = vmatpush1.msra.mxu1 %v478_v22  ;;  %v476_v29 = vld [vmem:[%s2359_s3] sm:$0xff]  ;;  %v685_v32 = vld [vmem:[%s2361_s5 + $0x78] sm:$0xff]  ;;  %v684_v33 = vld [vmem:[%s2361_s5 + $0x70] sm:$0xff]  ;;  %p1695_p6 = scmp.ne.s32.totalorder %s2312_s27, %s1694_s16  ;;  %s1698_s22 = sshll.u32 %s1765_s17, 4  ;;  %s1699_s22 = int_to_ptr.vmem [resolvable:$false] %s1698_s22 }
  0x30   : > { %1543 = vmatmul.mubr.msk.f32.gmra.mxu0 %vm367_vm1, %v364_v7  ;;  %607 = vmatprep.subr.mxu0 %v471_v8  ;;  %v683_v34 = vld [vmem:[%s2361_s5 + $0x68] sm:$0xff]  ;;  %v682_v35 = vld [vmem:[%s2361_s5 + $0x60] sm:$0xff]  ;;  %v681_v36 = vld [vmem:[%s2361_s5 + $0x58] sm:$0xff]  ;;  %s1700_s23 = scalar_lea.vmem %s1699_s22, 512  ;;  %p1701_p11 = scmp.lt.s32.totalorder %s2312_s27, %s1699_s22 }
  0x31   : > { %1545 = vmatprep.mubr.msk.f32.mxu0 %vm1764_vm0, %v1763_v0  ;;  %608 = vmatpush1.msra.mxu0 %v470_v9  ;;  %v680_v37 = vld [vmem:[%s2361_s5 + $0x50] sm:$0xff]  ;;  %v679_v38 = vld [vmem:[%s2361_s5 + $0x48] sm:$0xff]  ;;  %v678_v39 = vld [vmem:[%s2361_s5 + $0x40] sm:$0xff]  ;;  %p1696_p9 = pnand %p1695_p6, %p1856_p5  ;;  %p1702_p12 = scmp.lt.s32.totalorder %s1700_s23, %s1694_s16 }
  0x32   : > { %609 = vmatprep.subr.mxu0 %v469_v11  ;;  %524 = vmatprep.subr.mxu1 %v477_v25  ;;  %v677_v40 = vld [vmem:[%s2361_s5 + $0x38] sm:$0xff]  ;;  %v676_v41 = vld [vmem:[%s2361_s5 + $0x30] sm:$0xff]  ;;  %v675_v42 = vld [vmem:[%s2361_s5 + $0x28] sm:$0xff] }
  0x33   : > { %610 = vmatpush1.msra.mxu0 %v468_v13  ;;  %525 = vmatpush1.msra.mxu1 %v476_v29  ;;  %v674_v43 = vld [vmem:[%s2361_s5 + $0x20] sm:$0xff]  ;;  %v673_v44 = vld [vmem:[%s2361_s5 + $0x18] sm:$0xff]  ;;  %v672_v45 = vld [vmem:[%s2361_s5 + $0x10] sm:$0xff]  ;;  %p1697_p10 = pneg %p1696_p9  ;;  %p1703_p13 = por %p1702_p12, %p1701_p11 }
  0x34   : > { %1546 = vmatmul.mubr.msk.f32.gmra.mxu0 %vm367_vm1, %v365_v15  ;;  %611 = vmatprep.subr.mxu0 %v467_v16  ;;  %v671_v46 = vld [vmem:[%s2361_s5 + $0x8] sm:$0xff]  ;;  %v1440_v49 = vld [vmem:[%s2361_s5 + $0x100] sm:$0xff]  ;;  %v1439_v51 = vld [vmem:[%s2361_s5 + $0xf8] sm:$0xff] }
  0x35   : > { %612 = vmatpush1.msra.mxu0 %v466_v17  ;;  %651 = vmatprep.mubr.f32.mxu0 %v1763_v0  ;;  %v1441_v47 = vld [vmem:[%s2361_s5 + $0x108] sm:$0xff]  ;;  %v1438_v53 = vld [vmem:[%s2361_s5 + $0xf0] sm:$0xff]  ;;  %v1436_v57 = vld [vmem:[%s2361_s5 + $0xe0] sm:$0xff]  ;;  %p1704_p0 = pnand %p1703_p13, %p1697_p10 }
  0x36   : > { %613 = vmatprep.subr.mxu0 %v465_v19  ;;  %731 = vmatprep.subr.mxu1 %v1763_v0  ;;  %v1437_v55 = vld [vmem:[%s2361_s5 + $0xe8] sm:$0xff]  ;;  %v1435_v59 = vld [vmem:[%s2361_s5 + $0xd8] sm:$0xff]  ;;  %v1434_v60 = vld [vmem:[%s2361_s5 + $0xd0] sm:$0xff] }
  0x37   : > { %614 = vmatpush1.msra.mxu0 %v464_v21  ;;  %v1433_v61 = vld [vmem:[%s2361_s5 + $0xc8] sm:$0xff]  ;;  %v1432_v62 = vld [vmem:[%s2361_s5 + $0xc0] sm:$0xff]  ;;  %v1431_v63 = vld [vmem:[%s2361_s5 + $0xb8] sm:$0xff] }
  0x38   : > { %615 = vmatprep.subr.mxu0 %v463_v23  ;;  %v1430_v1 = vld [vmem:[%s2361_s5 + $0xb0] sm:$0xff]  ;;  %v1429_v2 = vld [vmem:[%s2361_s5 + $0xa8] sm:$0xff]  ;;  %v670_v3 = vld [vmem:[%s2361_s5] sm:$0xff] }
  0x39   : > { %616 = vmatpush1.msra.mxu0 %v462_v24  ;;  %v1428_v4 = vld [vmem:[%s2361_s5 + $0xa0] sm:$0xff]  ;;  %v687_v5 = vld [vmem:[%s2361_s5 + $0x88] sm:$0xff]  ;;  %v1427_v6 = vld [vmem:[%s2361_s5 + $0x98] sm:$0xff] }
  0x3a   : > { %617 = vmatprep.subr.mxu0 %v461_v26  ;;  %v686_v7 = vld [vmem:[%s2361_s5 + $0x80] sm:$0xff]  ;;  %v1426_v8 = vld [vmem:[%s2361_s5 + $0x90] sm:$0xff]  ;;  %v1443_v9 = vld [vmem:[%s2361_s5 + $0x118] sm:$0xff] }
  0x3b   : > { %618 = vmatpush1.msra.mxu0 %v460_v27  ;;  %v1442_v10 = vld [vmem:[%s2361_s5 + $0x110] sm:$0xff] }
  0x3c   : > { %1423 = vmatmul.mubr.msk.f32.vlgmr.msra.gmra.mxu0 %vm577_vm2, %v457_v28  ;;  %810 = vmatprep.subr.mxu0 %v1763_v0 }
  0x3d   : > { %657 = vmatprep.mubr.f32.mxu0 %v1763_v0  ;;  %811 = vmatpush1.msra.mxu0 %v685_v32 }
  0x3e   : > { %812 = vmatprep.subr.mxu0 %v1763_v0 }
  0x3f   : > { %813 = vmatpush1.msra.mxu0 %v684_v33 }
  0x40   : > { %1424 = vmatmul.mubr.msk.f32.gmra.mxu0 %vm577_vm2, %v458_v30  ;;  %814 = vmatprep.subr.mxu0 %v1763_v0 }
  0x41   : > { %663 = vmatprep.mubr.f32.mxu0 %v1763_v0  ;;  %815 = vmatpush1.msra.mxu0 %v683_v34  ;;  %v1463_v34 = vld [vmem:[%s2361_s5 + $0x198] sm:$0xff] }
  0x42   : > { %816 = vmatprep.subr.mxu0 %v1763_v0 }
  0x43   : > { %817 = vmatpush1.msra.mxu0 %v682_v35 }
  0x44   : > { %1425 = vmatmul.mubr.msk.f32.gmra.mxu0 %vm577_vm2, %v459_v31  ;;  %818 = vmatprep.subr.mxu0 %v1763_v0 }
  0x45   : > { %819 = vmatpush1.msra.mxu0 %v681_v36 }
  0x46   : > { %820 = vmatprep.subr.mxu0 %v1763_v0 }
  0x47   : > { %821 = vmatpush1.msra.mxu0 %v680_v37 }
  0x48   : > { %822 = vmatprep.subr.mxu0 %v1763_v0 }
  0x49   : > { %823 = vmatpush1.msra.mxu0 %v679_v38 }
  0x4a   : > { %824 = vmatprep.subr.mxu0 %v1763_v0 }
  0x4b   : > { %825 = vmatpush1.msra.mxu0 %v678_v39  ;;  %v1462_v39 = vld [vmem:[%s2361_s5 + $0x190] sm:$0xff] }
  0x4c   : > { %826 = vmatprep.subr.mxu0 %v1763_v0 }
  0x4d   : > { %827 = vmatpush1.msra.mxu0 %v677_v40 }
  0x4e   : > { %828 = vmatprep.subr.mxu0 %v1763_v0 }
  0x4f   : > { %829 = vmatpush1.msra.mxu0 %v676_v41 }
  0x50   : > { %830 = vmatprep.subr.mxu0 %v1763_v0 }
  0x51   : > { %831 = vmatpush1.msra.mxu0 %v675_v42  ;;  %v1461_v42 = vld [vmem:[%s2361_s5 + $0x188] sm:$0xff] }
  0x52   : > { %832 = vmatprep.subr.mxu0 %v1763_v0 }
  0x53   : > { %833 = vmatpush1.msra.mxu0 %v674_v43 }
  0x54   : > { %834 = vmatprep.subr.mxu0 %v1763_v0 }
  0x55   : > { %835 = vmatpush1.msra.mxu0 %v673_v44 }
  0x56   : > { %836 = vmatprep.subr.mxu0 %v1763_v0 }
  0x57   : > { %837 = vmatpush1.msra.mxu0 %v672_v45  ;;  %v1460_v45 = vld [vmem:[%s2361_s5 + $0x180] sm:$0xff] }
  0x58   : > { %838 = vmatprep.subr.mxu0 %v1763_v0 }
  0x59   : > { %839 = vmatpush1.msra.mxu0 %v671_v46  ;;  %v1459_v46 = vld [vmem:[%s2361_s5 + $0x178] sm:$0xff] }
  0x5a   : > { %840 = vmatprep.subr.mxu0 %v1763_v0 }
  0x5b   : > { %841 = vmatpush1.msra.mxu0 %v670_v3 }
  0x5c   : > { %870 = vmatprep.subr.mxu0 %v1763_v0 }
  0x5d   : > { %871 = vmatpush2.msra.mxu0 %v687_v5  ;;  %v1476_v5 = vld [vmem:[%s2363_s7 + $0x80] sm:$0xff] }
  0x5e   : > { %872 = vmatprep.subr.mxu0 %v1763_v0 }
  0x5f   : > { %873 = vmatpush2.msra.mxu0 %v686_v7  ;;  %v1475_v7 = vld [vmem:[%s2363_s7 + $0x78] sm:$0xff] }
  0xec   : > { %v443_v48 = vpop.f32.mrf.mxu0 }
  0xed   : > { %1420 = vmatmul.mubr.msk.f32.vlgmr.msra.gmra.mxu1 %vm484_vm3, %v443_v48  ;;  %v1457_v48 = vld [vmem:[%s2361_s5 + $0x168] sm:$0xff] }
  0xee   : > { %v1541_v50 = vpop.f32.mrf.mxu0  ;;  %564 = vmatprep.mubr.f32.mxu1 %v1763_v0  ;;  %732 = vmatpush1.msra.mxu1 %v1441_v47  ;;  %v1458_v47 = vld [vmem:[%s2361_s5 + $0x170] sm:$0xff] }
  0xef   : > { %733 = vmatprep.subr.mxu1 %v1763_v0  ;;  %v1455_v50 = vld [vmem:[%s2361_s5 + $0x158] sm:$0xff] }
  0xf0   : > { %v448_v52 = vpop.f32.mrf.mxu0  ;;  %734 = vmatpush1.msra.mxu1 %v1440_v49  ;;  %v1456_v49 = vld [vmem:[%s2361_s5 + $0x160] sm:$0xff] }
  0xf1   : > { %1421 = vmatmul.mubr.msk.f32.gmra.mxu1 %vm484_vm3, %v448_v52  ;;  %735 = vmatprep.subr.mxu1 %v1763_v0  ;;  %v1453_v52 = vld [vmem:[%s2361_s5 + $0x148] sm:$0xff] }
  0xf2   : > { %v1544_v54 = vpop.f32.mrf.mxu0  ;;  %570 = vmatprep.mubr.f32.mxu1 %v1763_v0  ;;  %736 = vmatpush1.msra.mxu1 %v1439_v51  ;;  %v1454_v51 = vld [vmem:[%s2361_s5 + $0x150] sm:$0xff] }
  0xf3   : > { %737 = vmatprep.subr.mxu1 %v1763_v0  ;;  %v1451_v54 = vld [vmem:[%s2361_s5 + $0x138] sm:$0xff] }
  0xf4   : > { %v453_v56 = vpop.f32.mrf.mxu0  ;;  %738 = vmatpush1.msra.mxu1 %v1438_v53  ;;  %v1452_v53 = vld [vmem:[%s2361_s5 + $0x140] sm:$0xff] }
  0xf5   : > { %1422 = vmatmul.mubr.msk.f32.gmra.mxu1 %vm484_vm3, %v453_v56  ;;  %739 = vmatprep.subr.mxu1 %v1763_v0  ;;  %v1449_v56 = vld [vmem:[%s2361_s5 + $0x128] sm:$0xff] }
  0xf6   : > { %v1547_v58 = vpop.f32.mrf.mxu0  ;;  %740 = vmatpush1.msra.mxu1 %v1437_v55  ;;  %v1450_v55 = vld [vmem:[%s2361_s5 + $0x130] sm:$0xff] }
  0xf7   : > { %741 = vmatprep.subr.mxu1 %v1763_v0  ;;  %v1465_v58 = vld [vmem:[%s2361_s5 + $0x1a8] sm:$0xff] }
  0xf8   : > { %742 = vmatpush1.msra.mxu1 %v1436_v57  ;;  %v1448_v57 = vld [vmem:[%s2361_s5 + $0x120] sm:$0xff] }
  0xf9   : > { %743 = vmatprep.subr.mxu1 %v1763_v0 }
  0xfa   : > { %744 = vmatpush1.msra.mxu1 %v1435_v59 }
  0xfb   : > { %745 = vmatprep.subr.mxu1 %v1763_v0 }
  0xfc   : > { %746 = vmatpush1.msra.mxu1 %v1434_v60  ;;  %v653_v11 = vpop.f32.mrf.mxu0 }
  0xfd   : > { %747 = vmatprep.subr.mxu1 %v1763_v0 }
  0xfe   : > { %748 = vmatpush1.msra.mxu1 %v1433_v61  ;;  %v655_v12 = vpop.f32.mrf.mxu0  ;;  %v1464_v61 = vld [vmem:[%s2361_s5 + $0x1a0] sm:$0xff] }
  0xff   : > { %749 = vmatprep.subr.mxu1 %v1763_v0 }
 0x100   : > { %750 = vmatpush1.msra.mxu1 %v1432_v62  ;;  %v659_v13 = vpop.f32.mrf.mxu0 }
 0x101   : > { %751 = vmatprep.subr.mxu1 %v1763_v0 }
 0x102   : > { %752 = vmatpush1.msra.mxu1 %v1431_v63  ;;  %v661_v16 = vpop.f32.mrf.mxu0 }
 0x103   : > { %753 = vmatprep.subr.mxu1 %v1763_v0 }
 0x104   : > { %754 = vmatpush1.msra.mxu1 %v1430_v1  ;;  %v665_v20 = vpop.f32.mrf.mxu0 }
 0x105   : > { %755 = vmatprep.subr.mxu1 %v1763_v0 }
 0x106   : > { %756 = vmatpush1.msra.mxu1 %v1429_v2  ;;  %v667_v26 = vpop.f32.mrf.mxu0 }
 0x107   : > { %757 = vmatprep.subr.mxu1 %v1763_v0 }
 0x108   : > { %758 = vmatpush1.msra.mxu1 %v1428_v4  ;;  %v1477_v4 = vld [vmem:[%s2363_s7 + $0x88] sm:$0xff] }
 0x109   : > { %759 = vmatprep.subr.mxu1 %v1763_v0  ;;  %1548 = vmatprep.subr.mxu0 %v1477_v4 }
 0x10a   : > { %760 = vmatpush1.msra.mxu1 %v1427_v6  ;;  %v1490_v6 = vld [vmem:[%s2363_s7 + $0xd0] sm:$0xff] }
 0x10b   : > { %761 = vmatprep.subr.mxu1 %v1763_v0 }
 0x10c   : > { %762 = vmatpush1.msra.mxu1 %v1426_v8  ;;  %v1489_v8 = vld [vmem:[%s2363_s7 + $0xc8] sm:$0xff] }
 0x10d   : > { %791 = vmatprep.subr.mxu1 %v1763_v0 }
 0x10e   : > { %792 = vmatpush2.msra.mxu1 %v1443_v9  ;;  %v1474_v9 = vld [vmem:[%s2363_s7 + $0x70] sm:$0xff] }
 0x10f   : > { %793 = vmatprep.subr.mxu1 %v1763_v0 }
 0x110   : > { %794 = vmatpush2.msra.mxu1 %v1442_v10  ;;  %v1488_v10 = vld [vmem:[%s2363_s7 + $0xc0] sm:$0xff] }
 0x111   : > { %921 = vmatprep.subr.mxu1 %v1763_v0 }
 0x1ad   : > { %v560_v14 = vpop.f32.mrf.mxu1 }
 0x1ae   : > { %v2096_v18 = vadd.f32 %v653_v11, %v560_v14  ;;  %v1473_v11 = vld [vmem:[%s2363_s7 + $0x68] sm:$0xff]  ;;  %v1486_v14 = vld [vmem:[%s2363_s7 + $0xb0] sm:$0xff] }
 0x1af   : > { %v562_v15 = vpop.f32.mrf.mxu1 }
 0x1b0   : > { %v656_v17 = vadd.f32 %v655_v12, %v562_v15  ;;  %v714_v30 = vrot.slane %v2096_v18, 1  ;;  %v905_v62 = vrot.slane %v2096_v18, 2  ;;  %v1487_v12 = vld [vmem:[%s2363_s7 + $0xb8] sm:$0xff] }
 0x1b1   : > { %v566_v19 = vpop.f32.mrf.mxu1  ;;  %v1471_v15 = vld [vmem:[%s2363_s7 + $0x58] sm:$0xff] }
 0x1b2   : > { %v2098_v21 = vadd.f32 %v659_v13, %v566_v19  ;;  %1446 = vmatprep.mubr.msk.f32.mxu0 %vm726_vm4, %v656_v17  ;;  %v717_v27 = vrot.slane %v656_v17, 1  ;;  %v908_v40 = vrot.slane %v656_v17, 2  ;;  %v1472_v13 = vld [vmem:[%s2363_s7 + $0x60] sm:$0xff]  ;;  %v1483_v19 = vld [vmem:[%s2363_s7 + $0x98] sm:$0xff] }
 0x1b3   : > { %v568_v22 = vpop.f32.mrf.mxu1  ;;  %875 = vmatmul.mubr.f32.vlgmr.msra.gmra.mxu0 %v2096_v18  ;;  %v1484_v17 = vld [vmem:[%s2363_s7 + $0xa0] sm:$0xff]  ;;  %v1469_v18 = vld [vmem:[%s2363_s7 + $0x48] sm:$0xff] }
 0x1b4   : > { %v2102_v23 = vadd.f32 %v661_v16, %v568_v22  ;;  %v715_v24 = vrot.slane %v2098_v21, 1  ;;  %v906_v59 = vrot.slane %v2098_v21, 2  ;;  %1549 = vmatpush3.msra.mxu0 %v1477_v4  ;;  %v1470_v16 = vld [vmem:[%s2363_s7 + $0x50] sm:$0xff] }
 0x1b5   : > { %v572_v25 = vpop.f32.mrf.mxu1  ;;  %1550 = vmatprep.subr.mxu0 %v1476_v5 }
 0x1b6   : > { %v718_v28 = vrot.slane %v2102_v23, 1  ;;  %v2106_v29 = vadd.f32 %v665_v20, %v572_v25  ;;  %1447 = vmatprep.mubr.msk.f32.mxu0 %vm726_vm4, %v2102_v23  ;;  %v716_v36 = vsel %vm713_vm5, %v714_v30, %v715_v24  ;;  %v909_v37 = vrot.slane %v2102_v23, 2  ;;  %1551 = vmatpush3.msra.mxu0 %v1476_v5  ;;  %v1025_v20 = vld [vmem:[%s2363_s7 + $0x40] sm:$0xff] }
 0x1b7   : > { %v574_v31 = vpop.f32.mrf.mxu1  ;;  %880 = vmatmul.mubr.f32.gmra.mxu0 %v2098_v21  ;;  %v907_v1 = vsel %vm904_vm6, %v905_v62, %v906_v59  ;;  %1552 = vmatprep.subr.mxu0 %v1475_v7  ;;  %v1482_v21 = vld [vmem:[%s2363_s7 + $0x90] sm:$0xff]  ;;  %v1493_v62 = vld [vmem:[%s2364_s8] ss:$0 sm:$0xff] }
 0x1b8   : > { %v2112_v32 = vadd.f32 %v667_v26, %v574_v31  ;;  %v719_v33 = vsel %vm713_vm5, %v717_v27, %v718_v28  ;;  %v720_v35 = vrot.slane %v2106_v29, 1  ;;  %v910_v44 = vsel %vm904_vm6, %v908_v40, %v909_v37  ;;  %1553 = vmatpush3.msra.mxu0 %v1475_v7 }
 0x1b9   : > { %1444 = vmatprep.mubr.msk.f32.mxu1 %vm726_vm4, %v719_v33  ;;  %v911_v63 = vrot.slane %v2106_v29, 2  ;;  %1554 = vmatprep.subr.mxu0 %v1474_v9 }
 0x1ba   : > { %v722_v38 = vrot.slane %v2112_v32, 1  ;;  %796 = vmatmul.mubr.f32.vlgmr.msra.gmra.mxu1 %v716_v36  ;;  %v721_v43 = vsel %vm713_vm5, %v715_v24, %v720_v35  ;;  %v913_v60 = vrot.slane %v2112_v32, 2  ;;  %1555 = vmatpush3.msra.mxu0 %v1474_v9  ;;  %v1468_v32 = vld [vmem:[%s2362_s6] ss:$0 sm:$0xff] }
 0x1bb   : > { %922 = vmatpush1.msra.mxu1 %v1463_v34  ;;  %v912_v3 = vsel %vm904_vm6, %v906_v59, %v911_v63  ;;  %1556 = vmatprep.subr.mxu0 %v1473_v11 }
 0x1bc   : > { %923 = vmatprep.subr.mxu1 %v1763_v0  ;;  %v723_v41 = vsel %vm713_vm5, %v718_v28, %v722_v38  ;;  %v914_v2 = vsel %vm904_vm6, %v909_v37, %v913_v60  ;;  %1557 = vmatpush3.msra.mxu0 %v1473_v11 }
 0x1bd   : > { %924 = vmatpush1.msra.mxu1 %v1462_v39  ;;  %1445 = vmatprep.mubr.msk.f32.mxu1 %vm726_vm4, %v723_v41 }
 0x1be   : > { %925 = vmatprep.subr.mxu1 %v1763_v0  ;;  %801 = vmatmul.mubr.f32.gmra.mxu1 %v721_v43 }
 0x1bf   : > { %926 = vmatpush1.msra.mxu1 %v1461_v42  ;;  %1466 = vmatprep.mubr.msk.f32.mxu1 %vm726_vm4, %v910_v44  ;;  %v1024_v44 = vld [vmem:[%s2363_s7 + $0x38] sm:$0xff] }
 0x1c0   : > { %927 = vmatprep.subr.mxu1 %v1763_v0  ;;  %1558 = vmatprep.subr.mxu0 %v1472_v13 }
 0x1c1   : > { %928 = vmatpush1.msra.mxu1 %v1460_v45  ;;  %1559 = vmatpush3.msra.mxu0 %v1472_v13 }
 0x1c2   : > { %929 = vmatprep.subr.mxu1 %v1763_v0  ;;  %1560 = vmatprep.subr.mxu0 %v1471_v15 }
 0x1c3   : > { %930 = vmatpush1.msra.mxu1 %v1459_v46  ;;  %1561 = vmatpush3.msra.mxu0 %v1471_v15 }
 0x1c4   : > { %931 = vmatprep.subr.mxu1 %v1763_v0  ;;  %1562 = vmatprep.subr.mxu0 %v1470_v16 }
 0x1c5   : > { %932 = vmatpush1.msra.mxu1 %v1458_v47  ;;  %1563 = vmatpush3.msra.mxu0 %v1470_v16 }
 0x1c6   : > { %933 = vmatprep.subr.mxu1 %v1763_v0  ;;  %1564 = vmatprep.subr.mxu0 %v1469_v18 }
 0x1c7   : > { %934 = vmatpush1.msra.mxu1 %v1457_v48  ;;  %1565 = vmatpush3.msra.mxu0 %v1469_v18 }
 0x1c8   : > { %935 = vmatprep.subr.mxu1 %v1763_v0  ;;  %1569 = vmatprep.subr.mxu0 %v1025_v20 }
 0x1c9   : > { %936 = vmatpush1.msra.mxu1 %v1456_v49  ;;  %v1023_v49 = vld [vmem:[%s2363_s7 + $0x30] sm:$0xff] }
 0x1ca   : > { %937 = vmatprep.subr.mxu1 %v1763_v0 }
 0x1cb   : > { %938 = vmatpush1.msra.mxu1 %v1455_v50  ;;  %v1022_v50 = vld [vmem:[%s2363_s7 + $0x28] sm:$0xff] }
 0x1cc   : > { %939 = vmatprep.subr.mxu1 %v1763_v0 }
 0x1cd   : > { %940 = vmatpush1.msra.mxu1 %v1454_v51  ;;  %v1021_v51 = vld [vmem:[%s2363_s7 + $0x20] sm:$0xff] }
 0x1ce   : > { %941 = vmatprep.subr.mxu1 %v1763_v0 }
 0x1cf   : > { %942 = vmatpush1.msra.mxu1 %v1453_v52  ;;  %v1020_v52 = vld [vmem:[%s2363_s7 + $0x18] sm:$0xff] }
 0x1d0   : > { %943 = vmatprep.subr.mxu1 %v1763_v0 }
 0x1d1   : > { %944 = vmatpush1.msra.mxu1 %v1452_v53  ;;  %v1019_v53 = vld [vmem:[%s2363_s7 + $0x10] sm:$0xff] }
 0x1d2   : > { %945 = vmatprep.subr.mxu1 %v1763_v0 }
 0x1d3   : > { %946 = vmatpush1.msra.mxu1 %v1451_v54  ;;  %v1018_v54 = vld [vmem:[%s2363_s7 + $0x8] sm:$0xff] }
 0x1d4   : > { %947 = vmatprep.subr.mxu1 %v1763_v0 }
 0x1d5   : > { %948 = vmatpush1.msra.mxu1 %v1450_v55  ;;  %v1017_v55 = vld [vmem:[%s2363_s7] sm:$0xff] }
 0x1d6   : > { %949 = vmatprep.subr.mxu1 %v1763_v0 }
 0x1d7   : > { %950 = vmatpush1.msra.mxu1 %v1449_v56 }
 0x1d8   : > { %951 = vmatprep.subr.mxu1 %v1763_v0 }
 0x1d9   : > { %952 = vmatpush1.msra.mxu1 %v1448_v57 }
 0x1da   : > { %981 = vmatprep.subr.mxu1 %v1763_v0 }
 0x1db   : > { %982 = vmatpush2.msra.mxu1 %v1465_v58 }
 0x1dc   : > { %983 = vmatprep.subr.mxu1 %v1763_v0  ;;  %v1485_v0 = vld [vmem:[%s2363_s7 + $0xa8] sm:$0xff] }
 0x1dd   : > { %984 = vmatpush2.msra.mxu1 %v1464_v61 }
 0x1de   : > { %986 = vmatmul.mubr.f32.vlgmr.msra.gmra.mxu1 %v907_v1  ;;  %1590 = vmatprep.subr.mxu1 %v1490_v6 }
 0x1df   : > { %1467 = vmatprep.mubr.msk.f32.mxu1 %vm726_vm4, %v914_v2  ;;  %1591 = vmatpush3.msra.mxu1 %v1490_v6 }
 0x1e0   : > { %1592 = vmatprep.subr.mxu1 %v1489_v8 }
 0x1e1   : > { %1593 = vmatpush3.msra.mxu1 %v1489_v8 }
 0x1e2   : > { %991 = vmatmul.mubr.f32.gmra.mxu1 %v912_v3  ;;  %1594 = vmatprep.subr.mxu1 %v1488_v10 }
 0x1e3   : > { %1595 = vmatpush3.msra.mxu1 %v1488_v10 }
 0x1e4   : > { %1596 = vmatprep.subr.mxu1 %v1487_v12 }
 0x1e5   : > { %1597 = vmatpush3.msra.mxu1 %v1487_v12 }
 0x1e6   : > { %1598 = vmatprep.subr.mxu1 %v1486_v14 }
 0x1e7   : > { %1599 = vmatpush3.msra.mxu1 %v1486_v14 }
 0x1e8   : > { %1600 = vmatprep.subr.mxu1 %v1485_v0 }
 0x1e9   : > { %1601 = vmatpush3.msra.mxu1 %v1485_v0 }
 0x1ea   : > { %1602 = vmatprep.subr.mxu1 %v1484_v17 }
 0x1eb   : > { %1603 = vmatpush3.msra.mxu1 %v1484_v17 }
 0x1ec   : > { %1604 = vmatprep.subr.mxu1 %v1483_v19 }
 0x1ed   : > { %1605 = vmatpush3.msra.mxu1 %v1483_v19 }
 0x1ee   : > { %1606 = vmatprep.subr.mxu1 %v1482_v21 }
 0x1ef   : > { %1607 = vmatpush3.msra.mxu1 %v1482_v21 }
 0x273   : > { %v876_v22 = vpop.f32.mrf.mxu0 }
 0x275   : > { %v878_v23 = vpop.f32.mrf.mxu0 }
 0x277   : > { %v881_v24 = vpop.f32.mrf.mxu0 }
 0x279   : > { %v883_v25 = vpop.f32.mrf.mxu0 }
 0x27a   : > { %v797_v26 = vpop.f32.mrf.mxu1 }
 0x27b   : > { %v877_v30 = vadd.f32 %v876_v22, %v797_v26 }
 0x27c   : > { %v799_v27 = vpop.f32.mrf.mxu1 }
 0x27e   : > { %v802_v28 = vpop.f32.mrf.mxu1 }
 0x27f   : > { %v882_v35 = vadd.f32 %v881_v24, %v802_v28 }
 0x280   : > { %v804_v29 = vpop.f32.mrf.mxu1 }
 0x29e   : > { %v987_v31 = vpop.f32.mrf.mxu1 }
 0x29f   : > { %v996_v33 = vadd.f32 %v987_v31, %v877_v30 }
 0x2a0   : > { %v989_v34 = vpop.f32.mrf.mxu1 }
 0x2a1   : > { %v1005_v36 = vadd.f32 %v1468_v32, %v996_v33 }
 0x2a2   : > { %v992_v37 = vpop.f32.mrf.mxu1 }
 0x2a3   : > { %v1007_v38 = vmax.f32 %v1005_v36, 0.0  ;;  %v997_v39 = vadd.f32 %v992_v37, %v882_v35 }
 0x2a4   : > { %v994_v40 = vpop.f32.mrf.mxu1 }
 0x2a5   : > { %1013 = vst.msk [vmem:[#allocation2 + $0x1] sm:$0xff] %vm1012_vm8, %v1007_v38  ;;  %v1006_v41 = vadd.f32 %v1468_v32, %v997_v39 }
 0x2a7   : > { %v1008_v42 = vmax.f32 %v1006_v41, 0.0 }
 0x2a9   : > { %1014 = vst.msk [vmem:[#allocation2 + $0x9] sm:$0xff] %vm1012_vm8, %v1008_v42 }
 0x2ac   : > { %v1026_v43 = vld [vmem:[#allocation2 + $0x1] sm:$0xff] }
 0x2ad   : > { %1566 = vmatprep.mubr.msk.f32.mxu0 %vm1012_vm8, %v1026_v43  ;;  %v1015_v48 = vld [vmem:[#allocation2] sm:$0xff] }
 0x2b0   : > { %v1027_v45 = vld [vmem:[#allocation2 + $0x9] sm:$0xff] }
 0x2b1   : > { %v1200_v46 = vld [vmem:[#allocation2 + $0x2] sm:$0xff]  ;;  %v1201_v47 = vld [vmem:[#allocation2 + $0xa] sm:$0xff]  ;;  %1567 = vmatmul.mubr.msk.f32.vlgmr.msra.gmra.mxu0 %vm1012_vm8, %v1027_v45 }
 0x2b2   : > { %1608 = vmatprep.mubr.msk.f32.mxu1 %vm1012_vm8, %v1200_v46  ;;  %1570 = vmatpush3.msra.mxu0 %v1025_v20  ;;  %v1016_v56 = vld [vmem:[#allocation2 + $0x8] sm:$0xff] }
 0x2b3   : > { %1587 = vmatprep.mubr.msk.f32.mxu0 %vm1012_vm8, %v1015_v48  ;;  %1571 = vmatprep.subr.mxu0 %v1024_v44 }
 0x2b4   : > { %1609 = vmatmul.mubr.msk.f32.vlgmr.msra.gmra.mxu1 %vm1012_vm8, %v1201_v47  ;;  %1572 = vmatpush3.msra.mxu0 %v1024_v44 }
 0x2b5   : > { %1573 = vmatprep.subr.mxu0 %v1023_v49 }
 0x2b6   : > { %1574 = vmatpush3.msra.mxu0 %v1023_v49 }
 0x2b7   : > { %1575 = vmatprep.subr.mxu0 %v1022_v50 }
 0x2b8   : > { %1576 = vmatpush3.msra.mxu0 %v1022_v50 }
 0x2b9   : > { %1577 = vmatprep.subr.mxu0 %v1021_v51 }
 0x2ba   : > { %1578 = vmatpush3.msra.mxu0 %v1021_v51 }
 0x2bb   : > { %1579 = vmatprep.subr.mxu0 %v1020_v52 }
 0x2bc   : > { %1580 = vmatpush3.msra.mxu0 %v1020_v52 }
 0x2bd   : > { %1581 = vmatprep.subr.mxu0 %v1019_v53 }
 0x2be   : > { %1582 = vmatpush3.msra.mxu0 %v1019_v53 }
 0x2bf   : > { %1583 = vmatprep.subr.mxu0 %v1018_v54 }
 0x2c0   : > { %1584 = vmatpush3.msra.mxu0 %v1018_v54 }
 0x2c1   : > { %1585 = vmatprep.subr.mxu0 %v1017_v55 }
 0x2c2   : > { %1586 = vmatpush3.msra.mxu0 %v1017_v55 }
 0x2c3   : > { %1588 = vmatmul.mubr.msk.f32.vlgmr.msra.gmra.mxu0 %vm1012_vm8, %v1016_v56 }
 0x371   : > { %v1568_v57 = vpop.f32.mrf.mxu0 }
 0x373   : > { %v1110_v58 = vpop.f32.mrf.mxu0 }
 0x374   : > { %v1610_v59 = vpop.f32.mrf.mxu1 }
 0x376   : > { %v1284_v3 = vpop.f32.mrf.mxu1 }
 0x383   : > { %v1589_v60 = vpop.f32.mrf.mxu0 }
 0x384   : > { %v1197_v61 = vadd.f32 %v1589_v60, %v1568_v57 }
 0x385   : > { %v1191_v63 = vpop.f32.mrf.mxu0 }
 0x386   : > { %v1294_v1 = vadd.f32 %v1610_v59, %v1197_v61  ;;  %v1192_v2 = vadd.f32 %v1191_v63, %v1110_v58 }
 0x388   : > { %v1303_v4 = vadd.f32 %v1493_v62, %v1294_v1  ;;  %v1293_v5 = vadd.f32 %v1284_v3, %v1192_v2 }
 0x38a   : > { %v1305_v6 = vmax.f32 %v1303_v4, 0.0  ;;  %v1302_v7 = vadd.f32 %v1493_v62, %v1293_v5 }
 0x38c   : > { %1307 = vst.msk [vmem:[%s353_s26 + $0x8] sm:$0xff] %vm577_vm2, %v1305_v6  ;;  %v1304_v8 = vmax.f32 %v1302_v7, 0.0 }
 0x38e   : > { %1306 = vst.msk [vmem:[%s353_s26] sm:$0xff] %vm577_vm2, %v1304_v8 }
 0x38f   : > { %1707 = shalt.err (!%p1704_p0)
}
 0x390   : > { %s1708_s21 = scalar_lea.hbm %s2310_s14, 256  ;;  %s1712_s26 = scalar_lea.hbm %s2365_s9, 512 }
 0x391   : > { %p1709_p1 = scmp.ne.s32.totalorder %s2310_s14, %s1708_s21  ;;  %p1713_p4 = scmp.lt.s32.totalorder %s2310_s14, %s2365_s9 }
 0x392   : > { %p1714_p7 = scmp.lt.s32.totalorder %s1712_s26, %s1708_s21 }
 0x393   : > { %p1710_p2 = pnand %p1709_p1, %p1856_p5 }
 0x394   : > { %p1715_p8 = por %p1714_p7, %p1713_p4 }
 0x395   : > { %p1711_p3 = pneg %p1710_p2 }
 0x397   : > { %p1716_p6 = pnand %p1715_p8, %p1711_p3 }
 0x399   : > { %1719 = shalt.err (!%p1716_p6)
}
 0x39a   : > { %s1766_s16 = smov 128   ;;  %s1767_s17 = smov 8  }
 0x39b   : > { %1616 = dma.vmem_to_hbm [thread:$0]  (%p1856_p5), %s2312_s27, 256, %s2310_s14, %s2316_s13, %s1766_s16, %s1766_s16, %s1767_s17  }
 0x39c PF: > { %p1628_p9 = scmp.ge.s32.totalorder %s1758_s12, 2  ;;  %s1337_s22 = sand.u32 1, %s1746_s30  }
 0x39d   : > { %p2369_p10 = scmp.ne.s32.totalorder %s2367_s20, 0  ;;  %s1338_s23 = scalar_lea.sflag [#allocation5], %s1337_s22 }
 0x39f   : > { %p1623_p11 = pnand %p1628_p9, %p2369_p10 }
 0x3a1   : > { %p1624_p12 = pneg %p1623_p11 }
 0x3a3   : > { %1741 = dma.done.wait (%p1624_p12), %s1338_s23, 256  }
 0x3a4   : > { %1743 = vsyncadd (%p1624_p12), %s1338_s23, 4294967040  ;;  %p20_p13 = scmp.ge.s32.totalorder %s1843_s15, 4   ;;  %s2370_s30 = smov %s1750_s10 }
 0x3a5   : > { %s2371_s10 = smov %s1754_s11  ;;  %s2372_s11 = smov %s1854_s18 }
 0x3a6   : > { %s2373_s12 = smov %s1843_s15  ;;  %22 = sbr.rel (!%p20_p13) target bundleno = 4 (0x4), region = 103 }
 0x3ab   :  { %1343 = vsyncpa [#allocation4], 1 }
 0x3ac   :  { %1345 = vsyncpa [#allocation4 + $0x1], 1 }
 0x3ad   :  { %1346 = vsyncpa [#allocation5], 1 }
 0x3ae   :  { %1348 = vsyncpa [#allocation5 + $0x1], 1 }

</bundles_post_ra>
